<compile_context>
chip_gen: v6e
topology: v6e:2x2x1
jax: 0.10.0
libtpu: 0.0.40
codegen_flags: <defaults>
</compile_context>

<pallas_src>
import functools

import jax
import jax.numpy as jnp
from jax.experimental import pallas as pl
from jax.experimental.pallas import tpu as pltpu


def _round_up(n, m):
    return (n + m - 1) // m * m


def _tpu_kind():
    """Lower-cased device_kind of the default device, or None if not a TPU."""
    try:
        dev = jax.devices()[0]
        if dev.platform != "tpu":
            return None
        return dev.device_kind.lower()
    except Exception:
        return None


def _decoder_kernel(x_ref, w1_ref, b1_ref, w2_ref, b2_ref, w3_ref, b3_ref, o_ref):
    """Fused linear1 -> ReLU -> linear2 -> ReLU -> linear3 on one batch tile.

    Weights/biases have constant index_maps, so Mosaic DMAs them once and keeps
    them resident in VMEM across all grid steps. Accumulation is f32."""
    x = x_ref[...]
    h = jnp.dot(x, w1_ref[...], preferred_element_type=jnp.float32) + b1_ref[...]
    h = jnp.maximum(h, 0.0)
    h = jnp.dot(h.astype(w2_ref.dtype), w2_ref[...],
                preferred_element_type=jnp.float32) + b2_ref[...]
    h = jnp.maximum(h, 0.0)
    out = jnp.dot(h.astype(w3_ref.dtype), w3_ref[...],
                  preferred_element_type=jnp.float32) + b3_ref[...]
    o_ref[...] = out.astype(o_ref.dtype)


def pack_decoder_params(params, *, compute_dtype=None, max_fold=32,
                        max_packed_weight_bytes=4 << 20):
    """Pack/pad weights once for the kernel. Returns (packed_params, fold, out_dim).

    Packing = (a) zero-pad layer-3 output columns to a multiple of 128 when
    out_dim is not a divisor/multiple of 128, (b) fold several samples per row
    via block-diagonal weights so every matmul dimension is lane-dense, and
    (c) cast weights to the compute dtype (biases stay f32)."""
    kind = _tpu_kind()
    if compute_dtype is None:
        # bf16 weights/x halve DMA + VMEM and drive the MXU at native width on
        # v5e/v6e/v7x; accumulation and biases stay f32 inside the kernel.
        compute_dtype = jnp.bfloat16 if kind is not None else jnp.float32

    w1, b1 = params["w1"], params["b1"]
    w2, b2 = params["w2"], params["b2"]
    w3, b3 = params["w3"], params["b3"]
    latent, h1 = w1.shape
    h2, out_dim = w3.shape

    # ---- Output lane density -------------------------------------------------
    if out_dim % 128 == 0:
        base_fold, col_pad = 1, 0
    elif 128 % out_dim == 0:
        base_fold, col_pad = 128 // out_dim, 0
    else:
        # Non-divisor widths: zero-pad layer-3 columns up to a multiple of 128;
        # the wrapper slices them off. Idle MXU lanes were free anyway.
        base_fold, col_pad = 1, _round_up(out_dim, 128) - out_dim
    out_dim_p = out_dim + col_pad
    if col_pad:
        w3 = jnp.pad(w3, ((0, 0), (0, col_pad)))
        b3 = jnp.pad(b3, (0, col_pad))

    # ---- Fold for lane-dense inputs / hidden activations ----------------------
    # Grow fold (in multiples of base_fold so fold*out_dim_p stays a multiple of
    # 128) until fold*latent reaches the MXU depth, as long as the block-diagonal
    # weights stay small.
    target_k = 256 if (kind and ("v6" in kind or "v7" in kind)) else 128
    item = jnp.dtype(compute_dtype).itemsize
    base_w_elems = latent * h1 + h1 * h2 + h2 * out_dim_p

    fold = base_fold
    while (fold * latent < target_k
           and fold + base_fold <= max_fold
           and (fold + base_fold) ** 2 * base_w_elems * item <= max_packed_weight_bytes):
        fold += base_fold

    if fold > 1:
        # kron(I_fold, W) == block_diag(W, ..., W): one fused op, no scatter loop.
        eye1 = jnp.eye(fold, dtype=w1.dtype)
        w1 = jnp.kron(eye1, w1)
        w2 = jnp.kron(eye1, w2)
        w3 = jnp.kron(eye1, w3)
        b1, b2, b3 = jnp.tile(b1, fold), jnp.tile(b2, fold), jnp.tile(b3, fold)

    packed = {
        "w1": w1.astype(compute_dtype), "b1": b1.reshape(1, -1).astype(jnp.float32),
        "w2": w2.astype(compute_dtype), "b2": b2.reshape(1, -1).astype(jnp.float32),
        "w3": w3.astype(compute_dtype), "b3": b3.reshape(1, -1).astype(jnp.float32),
    }
    return packed, fold, int(out_dim)


@functools.partial(jax.jit, static_argnames=("fold", "out_dim", "batch_tile", "out_dtype"))
def _decoder_forward_packed(x, packed, *, fold, out_dim, batch_tile=512,
                            out_dtype=jnp.float32):
    """Run the fused decoder kernel on pre-packed weights."""
    w1, b1 = packed["w1"], packed["b1"]
    w2, b2 = packed["w2"], packed["b2"]
    w3, b3 = packed["w3"], packed["b3"]

    orig_shape = x.shape
    latent = orig_shape[-1]
    x = x.reshape(-1, latent)
    B = x.shape[0]

    compute_dtype = w1.dtype
    if x.dtype != compute_dtype:
        x = x.astype(compute_dtype)

    in_dim = w1.shape[0]                 # fold * latent
    h1_p, h2_p = w1.shape[1], w2.shape[1]
    out_p = w3.shape[1]                  # fold * out_dim_p
    out_dim_p = out_p // fold

    kind = _tpu_kind()
    is_v7x = bool(kind) and "v7" in kind

    # ---- Batch tiling: balanced tiles, single pad of x ------------------------
    # bf16 packs (16,128) per vreg tile -> align packed-row tiles to 16; f32 to 8.
    align = 16 if jnp.dtype(compute_dtype).itemsize == 2 else 8
    batch_tile = max(align, _round_up(batch_tile, align))
    packed_rows = pl.cdiv(B, fold)
    n_steps = pl.cdiv(packed_rows, batch_tile)
    # v7x has 2 TensorCores sharing the "parallel" batch axis; give each a tile
    # when there is enough work. v5e/v6e are single-TC: extra steps are overhead.
    if is_v7x and n_steps == 1 and packed_rows >= 2 * align and packed_rows * fold >= 128:
        n_steps = 2
    tile = _round_up(pl.cdiv(packed_rows, n_steps), align)
    rows_pad = n_steps * tile

    b_needed = rows_pad * fold
    if b_needed != B:
        x = jnp.pad(x, ((0, b_needed - B), (0, 0)))
    # Row-major byte-identical packing: (rows_pad*fold, latent) -> (rows_pad, fold*latent)
    x = x.reshape(rows_pad, in_dim)

    # ---- VMEM budget -----------------------------------------------------------
    # Grid-invariant operands (constant index_map) are fetched once and stay
    # resident -> count them once, not double-buffered.
    # TODO(synk): pipeline_mode=pl.Buffered(1) on the weight/bias BlockSpecs would
    # also drop the compiler-side second buffer for them.
    weight_bytes = sum(int(a.size) * a.dtype.itemsize for a in (w1, b1, w2, b2, w3, b3))
    io_bytes = 2 * tile * (in_dim * jnp.dtype(compute_dtype).itemsize
                           + out_p * jnp.dtype(out_dtype).itemsize)
    act_bytes = tile * (h1_p + h2_p) * 4
    est = weight_bytes + io_bytes + act_bytes + (1 << 20)

    # Generation-aware cap: v7x has 64 MiB physical VMEM per TC (leave headroom
    # for compiler scratch); v5e/v6e have 128 MiB.
    cap = (96 << 20) if (kind and ("v5" in kind or "v6" in kind)) else (48 << 20)
    if est > cap:
        # TODO(synk): tile the layer-3 N dimension with a second ("arbitrary")
        # grid axis for very large decoders instead of requiring full residency.
        raise ValueError(
            f"Decoder kernel needs ~{est >> 20} MiB VMEM, exceeding the "
            f"{cap >> 20} MiB budget for this TPU generation; reduce batch_tile "
            "or input_size."
        )
    vmem_limit = None
    if est > (12 << 20):
        vmem_limit = min(_round_up(int(est * 3 // 2), 1 << 20), cap)

    in_specs = [
        pl.BlockSpec((tile, in_dim), lambda i: (i, 0)),
        # Grid-invariant weights/biases: constant index_map -> copied once,
        # never re-DMA'd across batch tiles.
        pl.BlockSpec(w1.shape, lambda i: (0, 0)),
        pl.BlockSpec(b1.shape, lambda i: (0, 0)),
        pl.BlockSpec(w2.shape, lambda i: (0, 0)),
        pl.BlockSpec(b2.shape, lambda i: (0, 0)),
        pl.BlockSpec(w3.shape, lambda i: (0, 0)),
        pl.BlockSpec(b3.shape, lambda i: (0, 0)),
    ]
    out_spec = pl.BlockSpec((tile, out_p), lambda i: (i, 0))

    out = pl.pallas_call(
        _decoder_kernel,
        out_shape=jax.ShapeDtypeStruct((rows_pad, out_p), out_dtype),
        grid=(n_steps,),
        in_specs=in_specs,
        out_specs=out_spec,
        compiler_params=pltpu.CompilerParams(
            dimension_semantics=("parallel",),
            vmem_limit_bytes=vmem_limit,
        ),
    )(x, w1, b1, w2, b2, w3, b3)

    # Undo packing: free row-major reshape, then drop padded rows / columns.
    out = out.reshape(rows_pad * fold, out_dim_p)[:B, :out_dim]
    return out.reshape(*orig_shape[:-1], out_dim)


def make_decoder(params, *, compute_dtype=None, batch_tile=512, out_dtype=jnp.float32):
    """Pack the weights ONCE and return a cached forward(x) callable."""
    packed, fold, out_dim = pack_decoder_params(params, compute_dtype=compute_dtype)

    def forward(x):
        return _decoder_forward_packed(x, packed, fold=fold, out_dim=out_dim,
                                       batch_tile=batch_tile, out_dtype=out_dtype)

    return forward


def decoder_forward(x, params, **kwargs):
    """One-shot convenience (re-packs weights each call; prefer make_decoder)."""
    return make_decoder(params, **kwargs)(x)


def init_decoder_params(key, input_size, latent_space_size):
    """Deterministic init mimicking nn.Linear's U(-1/sqrt(fan_in), 1/sqrt(fan_in)).

    Weights are stored as (in_features, out_features)."""
    dims = [
        (latent_space_size, input_size // 4),
        (input_size // 4, input_size // 2),
        (input_size // 2, input_size),
    ]
    params = {}
    for idx, (fan_in, fan_out) in enumerate(dims, start=1):
        key, kw, kb = jax.random.split(key, 3)
        bound = 1.0 / (fan_in ** 0.5)
        params[f"w{idx}"] = jax.random.uniform(
            kw, (fan_in, fan_out), jnp.float32, minval=-bound, maxval=bound
        )
        params[f"b{idx}"] = jax.random.uniform(
            kb, (fan_out,), jnp.float32, minval=-bound, maxval=bound
        )
    return params


def decoder_reference(x, params):
    """Plain-JAX reference reproducing the PyTorch forward."""
    h = jnp.maximum(x @ params["w1"] + params["b1"], 0.0)
    h = jnp.maximum(h @ params["w2"] + params["b2"], 0.0)
    return h @ params["w3"] + params["b3"]


if __name__ == "__main__":
    input_size = 64
    latent_space_size = 16
    batch = 8

    key = jax.random.PRNGKey(0)
    key, kx = jax.random.split(key)
    x = jax.random.normal(kx, (batch, latent_space_size), dtype=jnp.float32)
    params = init_decoder_params(key, input_size, latent_space_size)

    ref = decoder_reference(x, params)

    # Exact-numerics path (f32 compute) -> tight tolerance vs. reference.
    fwd_f32 = make_decoder(params, compute_dtype=jnp.float32)
    out_f32 = jax.block_until_ready(fwd_f32(x))
    assert out_f32.shape == (batch, input_size), out_f32.shape
    assert jnp.allclose(out_f32, ref, atol=1e-5, rtol=1e-5), "f32 mismatch vs reference"

    # Default (auto) path: bf16 x/weights on TPU, f32 accumulation -> loose tolerance.
    fwd_auto = make_decoder(params)
    out_auto = jax.block_until_ready(fwd_auto(x))
    assert out_auto.shape == (batch, input_size), out_auto.shape
    assert float(jnp.max(jnp.abs(out_auto - ref))) < 5e-2, "auto-precision mismatch vs reference"

    print("KERNEL_OK")
</pallas_src>

<mosaic_0001>
module attributes {stable_mosaic.version = 11 : i64} {
  func.func @_decoder_kernel(%arg0: i32, %arg1: memref<8x128xf32, #tpu.memory_space<vmem>>, %arg2: memref<128x128xf32, #tpu.memory_space<vmem>>, %arg3: memref<1x128xf32, #tpu.memory_space<vmem>>, %arg4: memref<128x256xf32, #tpu.memory_space<vmem>>, %arg5: memref<1x256xf32, #tpu.memory_space<vmem>>, %arg6: memref<256x512xf32, #tpu.memory_space<vmem>>, %arg7: memref<1x512xf32, #tpu.memory_space<vmem>>, %arg8: memref<8x512xf32, #tpu.memory_space<vmem>>) attributes {dimension_semantics = [#tpu.dimension_semantics<parallel>], iteration_bounds = array<i64: 1>, scalar_prefetch = 0 : i64, scratch_operands = 0 : i64, tpu.core_type = #tpu.core_type<tc>, window_params = [{transform_indices = @transform_0, window_bounds = array<i64: 8, 128>}, {pipeline_mode = #tpu.pipeline_mode<synchronous>, transform_indices = @transform_1, window_bounds = array<i64: 128, 128>}, {pipeline_mode = #tpu.pipeline_mode<synchronous>, transform_indices = @transform_2, window_bounds = array<i64: 1, 128>}, {pipeline_mode = #tpu.pipeline_mode<synchronous>, transform_indices = @transform_3, window_bounds = array<i64: 128, 256>}, {pipeline_mode = #tpu.pipeline_mode<synchronous>, transform_indices = @transform_4, window_bounds = array<i64: 1, 256>}, {pipeline_mode = #tpu.pipeline_mode<synchronous>, transform_indices = @transform_5, window_bounds = array<i64: 256, 512>}, {pipeline_mode = #tpu.pipeline_mode<synchronous>, transform_indices = @transform_6, window_bounds = array<i64: 1, 512>}, {transform_indices = @transform_7, window_bounds = array<i64: 8, 512>}]} {
    %c0 = arith.constant 0 : index
    %c0_0 = arith.constant 0 : index
    %0 = vector.load %arg1[%c0, %c0_0] : memref<8x128xf32, #tpu.memory_space<vmem>>, vector<8x128xf32>
    %c0_1 = arith.constant 0 : index
    %c0_2 = arith.constant 0 : index
    %1 = vector.load %arg2[%c0_1, %c0_2] : memref<128x128xf32, #tpu.memory_space<vmem>>, vector<128x128xf32>
    %cst = arith.constant dense<0.000000e+00> : vector<8x128xf32>
    %2 = tpu.matmul %0, %1, %cst {dimension_numbers = #tpu.dot_dimension_numbers<[1], [0], [0], [1], [0, 0, 1, 1], [], []>} : vector<8x128xf32>, vector<128x128xf32>, vector<8x128xf32> -> vector<8x128xf32>
    %c0_3 = arith.constant 0 : index
    %c0_4 = arith.constant 0 : index
    %3 = vector.load %arg3[%c0_3, %c0_4] : memref<1x128xf32, #tpu.memory_space<vmem>>, vector<1x128xf32>
    %4 = vector.broadcast %3 : vector<1x128xf32> to vector<8x128xf32>
    %5 = arith.addf %2, %4 : vector<8x128xf32>
    %cst_5 = arith.constant 0.000000e+00 : f32
    %6 = vector.broadcast %cst_5 : f32 to vector<8x128xf32>
    %7 = arith.maximumf %5, %6 : vector<8x128xf32>
    %c0_6 = arith.constant 0 : index
    %c0_7 = arith.constant 0 : index
    %8 = vector.load %arg4[%c0_6, %c0_7] : memref<128x256xf32, #tpu.memory_space<vmem>>, vector<128x256xf32>
    %cst_8 = arith.constant dense<0.000000e+00> : vector<8x256xf32>
    %9 = tpu.matmul %7, %8, %cst_8 {dimension_numbers = #tpu.dot_dimension_numbers<[1], [0], [0], [1], [0, 0, 1, 1], [], []>} : vector<8x128xf32>, vector<128x256xf32>, vector<8x256xf32> -> vector<8x256xf32>
    %c0_9 = arith.constant 0 : index
    %c0_10 = arith.constant 0 : index
    %10 = vector.load %arg5[%c0_9, %c0_10] : memref<1x256xf32, #tpu.memory_space<vmem>>, vector<1x256xf32>
    %11 = vector.broadcast %10 : vector<1x256xf32> to vector<8x256xf32>
    %12 = arith.addf %9, %11 : vector<8x256xf32>
    %cst_11 = arith.constant 0.000000e+00 : f32
    %13 = vector.broadcast %cst_11 : f32 to vector<8x256xf32>
    %14 = arith.maximumf %12, %13 : vector<8x256xf32>
    %c0_12 = arith.constant 0 : index
    %c0_13 = arith.constant 0 : index
    %15 = vector.load %arg6[%c0_12, %c0_13] : memref<256x512xf32, #tpu.memory_space<vmem>>, vector<256x512xf32>
    %cst_14 = arith.constant dense<0.000000e+00> : vector<8x512xf32>
    %16 = tpu.matmul %14, %15, %cst_14 {dimension_numbers = #tpu.dot_dimension_numbers<[1], [0], [0], [1], [0, 0, 1, 1], [], []>} : vector<8x256xf32>, vector<256x512xf32>, vector<8x512xf32> -> vector<8x512xf32>
    %c0_15 = arith.constant 0 : index
    %c0_16 = arith.constant 0 : index
    %17 = vector.load %arg7[%c0_15, %c0_16] : memref<1x512xf32, #tpu.memory_space<vmem>>, vector<1x512xf32>
    %18 = vector.broadcast %17 : vector<1x512xf32> to vector<8x512xf32>
    %19 = arith.addf %16, %18 : vector<8x512xf32>
    %c0_17 = arith.constant 0 : index
    %c0_18 = arith.constant 0 : index
    %20 = vector.load %arg8[%c0_17, %c0_18] : memref<8x512xf32, #tpu.memory_space<vmem>>, vector<8x512xf32>
    tpu.vector_store %arg8[%c0_17, %c0_18], %19 {strides = array<i32>} : memref<8x512xf32, #tpu.memory_space<vmem>>, vector<8x512xf32>,
    return
  }
  func.func @transform_0(%arg0: i32) -> (i32, i32) {
    %c0_i32 = arith.constant 0 : i32
    %c0_i32_0 = arith.constant 0 : i32
    return %arg0, %c0_i32 : i32, i32
  }
  func.func @transform_1(%arg0: i32) -> (i32, i32) {
    %c0_i32 = arith.constant 0 : i32
    %c0_i32_0 = arith.constant 0 : i32
    %c0_i32_1 = arith.constant 0 : i32
    return %c0_i32, %c0_i32_0 : i32, i32
  }
  func.func @transform_2(%arg0: i32) -> (i32, i32) {
    %c0_i32 = arith.constant 0 : i32
    %c0_i32_0 = arith.constant 0 : i32
    %c0_i32_1 = arith.constant 0 : i32
    return %c0_i32, %c0_i32_0 : i32, i32
  }
  func.func @transform_3(%arg0: i32) -> (i32, i32) {
    %c0_i32 = arith.constant 0 : i32
    %c0_i32_0 = arith.constant 0 : i32
    %c0_i32_1 = arith.constant 0 : i32
    return %c0_i32, %c0_i32_0 : i32, i32
  }
  func.func @transform_4(%arg0: i32) -> (i32, i32) {
    %c0_i32 = arith.constant 0 : i32
    %c0_i32_0 = arith.constant 0 : i32
    %c0_i32_1 = arith.constant 0 : i32
    return %c0_i32, %c0_i32_0 : i32, i32
  }
  func.func @transform_5(%arg0: i32) -> (i32, i32) {
    %c0_i32 = arith.constant 0 : i32
    %c0_i32_0 = arith.constant 0 : i32
    %c0_i32_1 = arith.constant 0 : i32
    return %c0_i32, %c0_i32_0 : i32, i32
  }
  func.func @transform_6(%arg0: i32) -> (i32, i32) {
    %c0_i32 = arith.constant 0 : i32
    %c0_i32_0 = arith.constant 0 : i32
    %c0_i32_1 = arith.constant 0 : i32
    return %c0_i32, %c0_i32_0 : i32, i32
  }
  func.func @transform_7(%arg0: i32) -> (i32, i32) {
    %c0_i32 = arith.constant 0 : i32
    %c0_i32_0 = arith.constant 0 : i32
    return %arg0, %c0_i32 : i32, i32
  }
}

</mosaic_0001>

<bundles_post_ra>
// kernel: _decoder_forward_packed.1
= control target key start
LH: loop header
LB: loop body
LE: loop exit
PB: predicated region body
PF: predicated region fallthrough
CT: control target
= control target key end

     0   :  { %12 = vsyncpa [#allocation3], 0  ;;  %s817_s0 = inlined_call_operand.vmem [shape: f32[8,128], index: 0, kind: input, shape index: {}]   ;;  %s818_s1 = inlined_call_operand.vmem [shape: f32[128,128], index: 1, kind: input, shape index: {}]   ;;  %s819_s2 = inlined_call_operand.vmem [shape: f32[1,128], index: 2, kind: input, shape index: {}]   ;;  %s820_s3 = inlined_call_operand.hbm [shape: f32[128,256], index: 3, kind: input, shape index: {}]   ;;  %s821_s4 = inlined_call_operand.vmem [shape: f32[1,256], index: 4, kind: input, shape index: {}]   ;;  %s822_s5 = inlined_call_operand.hbm [shape: f32[256,512], index: 5, kind: input, shape index: {}]   ;;  %s823_s6 = inlined_call_operand.vmem [shape: f32[1,512], index: 6, kind: input, shape index: {}]   ;;  %s824_s7 = inlined_call_operand.vmem [shape: f32[8,512], index: 7, kind: output, shape index: {}]  }
   0x1   :  { %13 = vsyncpa [#allocation5], 0  ;;  %s673_s24 = smov [#allocation2]  }
   0x2   :  { %s25_s25 = sshll.u32 %s673_s24, 4  ;;  %s26_s25 = int_to_ptr.vmem [resolvable:$true] %s25_s25 }
   0x3   :  { %s637_s26 = scalar_lea.vmem %s26_s25, 4096  ;;  %p642_p1 = scmp.lt.s32.totalorder %s26_s25, %s26_s25 }
   0x4   :  { %p638_p0 = scmp.ne.s32.totalorder %s26_s25, %s637_s26  ;;  %p643_p2 = scmp.lt.s32.totalorder %s637_s26, %s637_s26 }
   0x6   :  { %p644_p3 = por %p643_p2, %p642_p1 }
   0x8   :  { %p645_p4 = pnand %p644_p3, %p638_p0 }
   0xa   :  { %648 = shalt.err (!%p645_p4)
}
   0xb   :  { %s674_s27 = smov 256   ;;  %s675_s28 = smov 16  }
   0xc   :  { %31 = dma.hbm_to_vmem [thread:$0]  %s820_s3, 4096, %s26_s25, [#allocation3], %s674_s27, %s674_s27, %s675_s28  }
   0xd   :  { %s676_s8 = smov [#allocation4]  }
   0xe   :  { %s39_s9 = sshll.u32 %s676_s8, 4  ;;  %s40_s9 = int_to_ptr.vmem [resolvable:$true] %s39_s9 }
   0xf   :  { %s657_s10 = scalar_lea.vmem %s40_s9, 16384  ;;  %p662_p6 = scmp.lt.s32.totalorder %s40_s9, %s40_s9 }
  0x10   :  { %p658_p5 = scmp.ne.s32.totalorder %s40_s9, %s657_s10  ;;  %p663_p7 = scmp.lt.s32.totalorder %s657_s10, %s657_s10 }
  0x12   :  { %p664_p8 = por %p663_p7, %p662_p6 }
  0x14   :  { %p665_p9 = pnand %p664_p8, %p658_p5 }
  0x16   :  { %668 = shalt.err (!%p665_p9)
}
  0x17   :  { %s677_s11 = smov 512   ;;  %s678_s12 = smov 32  }
  0x18   :  { %45 = dma.hbm_to_vmem [thread:$0]  %s822_s5, 16384, %s40_s9, [#allocation5], %s677_s11, %s677_s11, %s678_s12  }
  0x19   :  { %669 = dma.done.wait [#allocation3], 4096  }
  0x1a   :  { %670 = vsyncadd [#allocation3], 4294963200 }
  0x1b   :  { %671 = dma.done.wait [#allocation5], 16384  }
  0x1c   :  { %672 = vsyncadd [#allocation5], 4294950912  ;;  %v679_v0 = vmov 0.0   ;;  %vm680_vm0 = vmmov 0   ;;  %v70_v1 = vld [vmem:[%s818_s1 + $0x78] sm:$0xff]  ;;  %v69_v2 = vld [vmem:[%s818_s1 + $0x70] sm:$0xff] }
  0x1d   :  { %586 = vmatprep.subr.mxu0 %v679_v0  ;;  %618 = vmatprep.mubr.msk.f32.mxu0 %vm680_vm0, %v679_v0  ;;  %v68_v3 = vld [vmem:[%s818_s1 + $0x68] sm:$0xff]  ;;  %v67_v4 = vld [vmem:[%s818_s1 + $0x60] sm:$0xff]  ;;  %v66_v5 = vld [vmem:[%s818_s1 + $0x58] sm:$0xff] }
  0x1e   :  { %257 = vmatprep.mubr.f32.mxu1 %v679_v0  ;;  %587 = vmatpush3.msra.mxu0 %v70_v1  ;;  %v180_v6 = vld [vmem:[#allocation2 + $0xf8] sm:$0xff]  ;;  %v179_v7 = vld [vmem:[#allocation2 + $0xf0] sm:$0xff]  ;;  %v178_v8 = vld [vmem:[#allocation2 + $0xe8] sm:$0xff] }
  0x1f   :  { %588 = vmatprep.subr.mxu0 %v679_v0  ;;  %193 = vmatprep.subr.mxu1 %v180_v6  ;;  %v177_v9 = vld [vmem:[#allocation2 + $0xe0] sm:$0xff]  ;;  %v176_v10 = vld [vmem:[#allocation2 + $0xd8] sm:$0xff]  ;;  %v65_v11 = vld [vmem:[%s818_s1 + $0x50] sm:$0xff] }
  0x20   :  { %589 = vmatpush3.msra.mxu0 %v69_v2  ;;  %194 = vmatpush1.msra.mxu1 %v179_v7  ;;  %v175_v12 = vld [vmem:[#allocation2 + $0xd0] sm:$0xff]  ;;  %v174_v13 = vld [vmem:[#allocation2 + $0xc8] sm:$0xff]  ;;  %v173_v15 = vld [vmem:[#allocation2 + $0xc0] sm:$0xff] }
  0x21   :  { %590 = vmatprep.subr.mxu0 %v679_v0  ;;  %195 = vmatprep.subr.mxu1 %v178_v8  ;;  %v64_v14 = vld [vmem:[%s818_s1 + $0x48] sm:$0xff]  ;;  %v172_v16 = vld [vmem:[#allocation2 + $0xb8] sm:$0xff]  ;;  %v63_v17 = vld [vmem:[%s818_s1 + $0x40] sm:$0xff] }
  0x22   :  { %591 = vmatpush3.msra.mxu0 %v68_v3  ;;  %196 = vmatpush1.msra.mxu1 %v177_v9  ;;  %v171_v18 = vld [vmem:[#allocation2 + $0xb0] sm:$0xff]  ;;  %v170_v19 = vld [vmem:[#allocation2 + $0xa8] sm:$0xff]  ;;  %v62_v20 = vld [vmem:[%s818_s1 + $0x38] sm:$0xff] }
  0x23   :  { %592 = vmatprep.subr.mxu0 %v679_v0  ;;  %197 = vmatprep.subr.mxu1 %v176_v10  ;;  %v169_v21 = vld [vmem:[#allocation2 + $0xa0] sm:$0xff]  ;;  %v168_v22 = vld [vmem:[#allocation2 + $0x98] sm:$0xff]  ;;  %v61_v23 = vld [vmem:[%s818_s1 + $0x30] sm:$0xff] }
  0x24   :  { %593 = vmatpush3.msra.mxu0 %v67_v4  ;;  %198 = vmatpush1.msra.mxu1 %v175_v12  ;;  %v167_v24 = vld [vmem:[#allocation2 + $0x90] sm:$0xff]  ;;  %v166_v25 = vld [vmem:[#allocation2 + $0x88] sm:$0xff]  ;;  %v165_v27 = vld [vmem:[#allocation2 + $0x80] sm:$0xff] }
  0x25   :  { %594 = vmatprep.subr.mxu0 %v679_v0  ;;  %199 = vmatprep.subr.mxu1 %v174_v13  ;;  %v60_v26 = vld [vmem:[%s818_s1 + $0x28] sm:$0xff]  ;;  %v164_v28 = vld [vmem:[#allocation2 + $0x78] sm:$0xff]  ;;  %v59_v29 = vld [vmem:[%s818_s1 + $0x20] sm:$0xff] }
  0x26   :  { %595 = vmatpush3.msra.mxu0 %v66_v5  ;;  %200 = vmatpush1.msra.mxu1 %v173_v15  ;;  %v163_v30 = vld [vmem:[#allocation2 + $0x70] sm:$0xff]  ;;  %v162_v31 = vld [vmem:[#allocation2 + $0x68] sm:$0xff]  ;;  %v58_v32 = vld [vmem:[%s818_s1 + $0x18] sm:$0xff] }
  0x27   :  { %596 = vmatprep.subr.mxu0 %v679_v0  ;;  %201 = vmatprep.subr.mxu1 %v172_v16  ;;  %v161_v33 = vld [vmem:[#allocation2 + $0x60] sm:$0xff]  ;;  %v160_v34 = vld [vmem:[#allocation2 + $0x58] sm:$0xff]  ;;  %v57_v35 = vld [vmem:[%s818_s1 + $0x10] sm:$0xff] }
  0x28   :  { %597 = vmatpush3.msra.mxu0 %v65_v11  ;;  %202 = vmatpush1.msra.mxu1 %v171_v18  ;;  %v159_v36 = vld [vmem:[#allocation2 + $0x50] sm:$0xff]  ;;  %v158_v37 = vld [vmem:[#allocation2 + $0x48] sm:$0xff]  ;;  %v157_v39 = vld [vmem:[#allocation2 + $0x40] sm:$0xff] }
  0x29   :  { %598 = vmatprep.subr.mxu0 %v679_v0  ;;  %203 = vmatprep.subr.mxu1 %v170_v19  ;;  %v56_v38 = vld [vmem:[%s818_s1 + $0x8] sm:$0xff]  ;;  %v156_v40 = vld [vmem:[#allocation2 + $0x38] sm:$0xff]  ;;  %v55_v41 = vld [vmem:[%s818_s1] sm:$0xff] }
  0x2a   :  { %599 = vmatpush3.msra.mxu0 %v64_v14  ;;  %204 = vmatpush1.msra.mxu1 %v169_v21  ;;  %v155_v42 = vld [vmem:[#allocation2 + $0x30] sm:$0xff]  ;;  %v54_v43 = vld [vmem:[%s817_s0] sm:$0xff]  ;;  %v154_v44 = vld [vmem:[#allocation2 + $0x28] sm:$0xff] }
  0x2b   :  { %600 = vmatprep.subr.mxu0 %v679_v0  ;;  %205 = vmatprep.subr.mxu1 %v168_v22  ;;  %v153_v45 = vld [vmem:[#allocation2 + $0x20] sm:$0xff]  ;;  %v152_v46 = vld [vmem:[#allocation2 + $0x18] sm:$0xff]  ;;  %v151_v47 = vld [vmem:[#allocation2 + $0x10] sm:$0xff] }
  0x2c   :  { %601 = vmatpush3.msra.mxu0 %v63_v17  ;;  %206 = vmatpush1.msra.mxu1 %v167_v24  ;;  %v150_v48 = vld [vmem:[#allocation2 + $0x8] sm:$0xff]  ;;  %v149_v49 = vld [vmem:[#allocation2] sm:$0xff]  ;;  %v329_v51 = vld [vmem:[#allocation4 + $0x1f8] sm:$0xff] }
  0x2d   :  { %602 = vmatprep.subr.mxu0 %v679_v0  ;;  %207 = vmatprep.subr.mxu1 %v166_v25  ;;  %v327_v50 = vld [vmem:[#allocation4 + $0x1e8] sm:$0xff]  ;;  %v326_v52 = vld [vmem:[#allocation4 + $0x1e0] sm:$0xff] }
  0x2e   :  { %603 = vmatpush3.msra.mxu0 %v62_v20  ;;  %208 = vmatpush1.msra.mxu1 %v165_v27  ;;  %v323_v53 = vld [vmem:[#allocation4 + $0x1c8] sm:$0xff]  ;;  %v322_v54 = vld [vmem:[#allocation4 + $0x1c0] sm:$0xff] }
  0x2f   :  { %604 = vmatprep.subr.mxu0 %v679_v0  ;;  %209 = vmatprep.subr.mxu1 %v164_v28  ;;  %v319_v55 = vld [vmem:[#allocation4 + $0x1a8] sm:$0xff]  ;;  %v318_v56 = vld [vmem:[#allocation4 + $0x1a0] sm:$0xff] }
  0x30   :  { %605 = vmatpush3.msra.mxu0 %v61_v23  ;;  %210 = vmatpush1.msra.mxu1 %v163_v30  ;;  %v315_v57 = vld [vmem:[#allocation4 + $0x188] sm:$0xff]  ;;  %v314_v58 = vld [vmem:[#allocation4 + $0x180] sm:$0xff] }
  0x31   :  { %606 = vmatprep.subr.mxu0 %v679_v0  ;;  %211 = vmatprep.subr.mxu1 %v162_v31  ;;  %v311_v59 = vld [vmem:[#allocation4 + $0x168] sm:$0xff]  ;;  %v310_v60 = vld [vmem:[#allocation4 + $0x160] sm:$0xff] }
  0x32   :  { %607 = vmatpush3.msra.mxu0 %v60_v26  ;;  %212 = vmatpush1.msra.mxu1 %v161_v33  ;;  %v307_v61 = vld [vmem:[#allocation4 + $0x148] sm:$0xff]  ;;  %v306_v62 = vld [vmem:[#allocation4 + $0x140] sm:$0xff] }
  0x33   :  { %608 = vmatprep.subr.mxu0 %v679_v0  ;;  %213 = vmatprep.subr.mxu1 %v160_v34  ;;  %v303_v63 = vld [vmem:[#allocation4 + $0x128] sm:$0xff]  ;;  %v298_v2 = vld [vmem:[#allocation4 + $0x100] sm:$0xff] }
  0x34   :  { %609 = vmatpush3.msra.mxu0 %v59_v29  ;;  %214 = vmatpush1.msra.mxu1 %v159_v36  ;;  %v299_v1 = vld [vmem:[#allocation4 + $0x108] sm:$0xff]  ;;  %v294_v4 = vld [vmem:[#allocation4 + $0xe0] sm:$0xff] }
  0x35   :  { %610 = vmatprep.subr.mxu0 %v679_v0  ;;  %215 = vmatprep.subr.mxu1 %v158_v37  ;;  %v295_v3 = vld [vmem:[#allocation4 + $0xe8] sm:$0xff]  ;;  %v290_v6 = vld [vmem:[#allocation4 + $0xc0] sm:$0xff] }
  0x36   :  { %611 = vmatpush3.msra.mxu0 %v58_v32  ;;  %216 = vmatpush1.msra.mxu1 %v157_v39  ;;  %v291_v5 = vld [vmem:[#allocation4 + $0xc8] sm:$0xff]  ;;  %v286_v8 = vld [vmem:[#allocation4 + $0xa0] sm:$0xff] }
  0x37   :  { %612 = vmatprep.subr.mxu0 %v679_v0  ;;  %217 = vmatprep.subr.mxu1 %v156_v40  ;;  %v287_v7 = vld [vmem:[#allocation4 + $0xa8] sm:$0xff]  ;;  %v282_v10 = vld [vmem:[#allocation4 + $0x80] sm:$0xff] }
  0x38   :  { %613 = vmatpush3.msra.mxu0 %v57_v35  ;;  %218 = vmatpush1.msra.mxu1 %v155_v42  ;;  %v283_v9 = vld [vmem:[#allocation4 + $0x88] sm:$0xff]  ;;  %v278_v12 = vld [vmem:[#allocation4 + $0x60] sm:$0xff] }
  0x39   :  { %614 = vmatprep.subr.mxu0 %v679_v0  ;;  %219 = vmatprep.subr.mxu1 %v154_v44  ;;  %v279_v11 = vld [vmem:[#allocation4 + $0x68] sm:$0xff]  ;;  %v274_v14 = vld [vmem:[#allocation4 + $0x40] sm:$0xff] }
  0x3a   :  { %615 = vmatpush3.msra.mxu0 %v56_v38  ;;  %220 = vmatpush1.msra.mxu1 %v153_v45  ;;  %v275_v13 = vld [vmem:[#allocation4 + $0x48] sm:$0xff]  ;;  %v270_v16 = vld [vmem:[#allocation4 + $0x20] sm:$0xff] }
  0x3b   :  { %616 = vmatprep.subr.mxu0 %v679_v0  ;;  %221 = vmatprep.subr.mxu1 %v152_v46  ;;  %v302_v0 = vld [vmem:[#allocation4 + $0x120] sm:$0xff]  ;;  %v271_v15 = vld [vmem:[#allocation4 + $0x28] sm:$0xff] }
  0x3c   :  { %617 = vmatpush3.msra.mxu0 %v55_v41  ;;  %222 = vmatpush1.msra.mxu1 %v151_v47  ;;  %v267_v17 = vld [vmem:[#allocation4 + $0x8] sm:$0xff]  ;;  %v266_v18 = vld [vmem:[#allocation4] sm:$0xff] }
  0x3d   :  { %619 = vmatmul.mubr.f32.vlgmr.msra.gmra.mxu0 %v54_v43  ;;  %223 = vmatprep.subr.mxu1 %v150_v48  ;;  %v391_v19 = vld [vmem:[#allocation4 + $0x3e8] sm:$0xff]  ;;  %v390_v20 = vld [vmem:[#allocation4 + $0x3e0] sm:$0xff]  ;;  %v328_v48 = vld [vmem:[#allocation4 + $0x1f0] sm:$0xff] }
  0x3e   :  { %224 = vmatpush1.msra.mxu1 %v149_v49  ;;  %416 = vmatprep.subr.mxu0 %v327_v50  ;;  %v387_v21 = vld [vmem:[#allocation4 + $0x3c8] sm:$0xff]  ;;  %v386_v22 = vld [vmem:[#allocation4 + $0x3c0] sm:$0xff]  ;;  %v325_v49 = vld [vmem:[#allocation4 + $0x1d8] sm:$0xff] }
  0x3f   :  { %487 = vmatprep.subr.mxu1 %v329_v51  ;;  %417 = vmatpush1.msra.mxu0 %v326_v52  ;;  %v383_v23 = vld [vmem:[#allocation4 + $0x3a8] sm:$0xff]  ;;  %v382_v24 = vld [vmem:[#allocation4 + $0x3a0] sm:$0xff]  ;;  %v324_v50 = vld [vmem:[#allocation4 + $0x1d0] sm:$0xff] }
  0x40   :  { %418 = vmatprep.subr.mxu0 %v323_v53  ;;  %v379_v25 = vld [vmem:[#allocation4 + $0x388] sm:$0xff]  ;;  %v378_v26 = vld [vmem:[#allocation4 + $0x380] sm:$0xff]  ;;  %v321_v51 = vld [vmem:[#allocation4 + $0x1b8] sm:$0xff] }
  0x41   :  { %419 = vmatpush1.msra.mxu0 %v322_v54  ;;  %v375_v27 = vld [vmem:[#allocation4 + $0x368] sm:$0xff]  ;;  %v374_v28 = vld [vmem:[#allocation4 + $0x360] sm:$0xff]  ;;  %v320_v52 = vld [vmem:[#allocation4 + $0x1b0] sm:$0xff] }
  0x42   :  { %420 = vmatprep.subr.mxu0 %v319_v55  ;;  %v371_v29 = vld [vmem:[#allocation4 + $0x348] sm:$0xff]  ;;  %v370_v30 = vld [vmem:[#allocation4 + $0x340] sm:$0xff]  ;;  %v317_v53 = vld [vmem:[#allocation4 + $0x198] sm:$0xff] }
  0x43   :  { %421 = vmatpush1.msra.mxu0 %v318_v56  ;;  %v367_v31 = vld [vmem:[#allocation4 + $0x328] sm:$0xff]  ;;  %v366_v32 = vld [vmem:[#allocation4 + $0x320] sm:$0xff]  ;;  %v316_v54 = vld [vmem:[#allocation4 + $0x190] sm:$0xff] }
  0x44   :  { %422 = vmatprep.subr.mxu0 %v315_v57  ;;  %v363_v33 = vld [vmem:[#allocation4 + $0x308] sm:$0xff]  ;;  %v362_v34 = vld [vmem:[#allocation4 + $0x300] sm:$0xff]  ;;  %v313_v55 = vld [vmem:[#allocation4 + $0x178] sm:$0xff] }
  0x45   :  { %423 = vmatpush1.msra.mxu0 %v314_v58  ;;  %v359_v35 = vld [vmem:[#allocation4 + $0x2e8] sm:$0xff]  ;;  %v358_v36 = vld [vmem:[#allocation4 + $0x2e0] sm:$0xff]  ;;  %v312_v56 = vld [vmem:[#allocation4 + $0x170] sm:$0xff] }
  0x46   :  { %424 = vmatprep.subr.mxu0 %v311_v59  ;;  %v355_v37 = vld [vmem:[#allocation4 + $0x2c8] sm:$0xff]  ;;  %v354_v38 = vld [vmem:[#allocation4 + $0x2c0] sm:$0xff]  ;;  %v309_v57 = vld [vmem:[#allocation4 + $0x158] sm:$0xff] }
  0x47   :  { %425 = vmatpush1.msra.mxu0 %v310_v60  ;;  %v351_v39 = vld [vmem:[#allocation4 + $0x2a8] sm:$0xff]  ;;  %v350_v40 = vld [vmem:[#allocation4 + $0x2a0] sm:$0xff]  ;;  %v308_v58 = vld [vmem:[#allocation4 + $0x150] sm:$0xff] }
  0x48   :  { %426 = vmatprep.subr.mxu0 %v307_v61  ;;  %v347_v41 = vld [vmem:[#allocation4 + $0x288] sm:$0xff]  ;;  %v346_v42 = vld [vmem:[#allocation4 + $0x280] sm:$0xff]  ;;  %v305_v59 = vld [vmem:[#allocation4 + $0x138] sm:$0xff] }
  0x49   :  { %427 = vmatpush1.msra.mxu0 %v306_v62  ;;  %v568_v43 = vld [vmem:[%s819_s2] ss:$0 sm:$0xff]  ;;  %v304_v60 = vld [vmem:[#allocation4 + $0x130] sm:$0xff]  ;;  %v301_v61 = vld [vmem:[#allocation4 + $0x118] sm:$0xff] }
  0x4a   :  { %428 = vmatprep.subr.mxu0 %v303_v63  ;;  %v300_v62 = vld [vmem:[#allocation4 + $0x110] sm:$0xff]  ;;  %v297_v63 = vld [vmem:[#allocation4 + $0xf8] sm:$0xff] }
  0x4b   :  { %429 = vmatpush1.msra.mxu0 %v302_v0  ;;  %v296_v0 = vld [vmem:[#allocation4 + $0xf0] sm:$0xff] }
  0x4c   :  { %430 = vmatprep.subr.mxu0 %v299_v1  ;;  %v293_v1 = vld [vmem:[#allocation4 + $0xd8] sm:$0xff] }
  0x4d   :  { %431 = vmatpush1.msra.mxu0 %v298_v2  ;;  %v292_v2 = vld [vmem:[#allocation4 + $0xd0] sm:$0xff] }
  0x4e   :  { %432 = vmatprep.subr.mxu0 %v295_v3  ;;  %v289_v3 = vld [vmem:[#allocation4 + $0xb8] sm:$0xff] }
  0x4f   :  { %433 = vmatpush1.msra.mxu0 %v294_v4  ;;  %v288_v4 = vld [vmem:[#allocation4 + $0xb0] sm:$0xff] }
  0x50   :  { %434 = vmatprep.subr.mxu0 %v291_v5  ;;  %v285_v5 = vld [vmem:[#allocation4 + $0x98] sm:$0xff] }
  0x51   :  { %435 = vmatpush1.msra.mxu0 %v290_v6  ;;  %v284_v6 = vld [vmem:[#allocation4 + $0x90] sm:$0xff] }
  0x52   :  { %436 = vmatprep.subr.mxu0 %v287_v7  ;;  %v281_v7 = vld [vmem:[#allocation4 + $0x78] sm:$0xff] }
  0x53   :  { %437 = vmatpush1.msra.mxu0 %v286_v8  ;;  %v280_v8 = vld [vmem:[#allocation4 + $0x70] sm:$0xff] }
  0x54   :  { %438 = vmatprep.subr.mxu0 %v283_v9  ;;  %v277_v9 = vld [vmem:[#allocation4 + $0x58] sm:$0xff] }
  0x55   :  { %439 = vmatpush1.msra.mxu0 %v282_v10  ;;  %v276_v10 = vld [vmem:[#allocation4 + $0x50] sm:$0xff] }
  0x56   :  { %440 = vmatprep.subr.mxu0 %v279_v11  ;;  %v273_v11 = vld [vmem:[#allocation4 + $0x38] sm:$0xff] }
  0x57   :  { %441 = vmatpush1.msra.mxu0 %v278_v12  ;;  %v272_v12 = vld [vmem:[#allocation4 + $0x30] sm:$0xff] }
  0x58   :  { %442 = vmatprep.subr.mxu0 %v275_v13  ;;  %v269_v13 = vld [vmem:[#allocation4 + $0x18] sm:$0xff] }
  0x59   :  { %443 = vmatpush1.msra.mxu0 %v274_v14  ;;  %v268_v14 = vld [vmem:[#allocation4 + $0x10] sm:$0xff] }
  0x5a   :  { %444 = vmatprep.subr.mxu0 %v271_v15  ;;  %v393_v15 = vld [vmem:[#allocation4 + $0x3f8] sm:$0xff] }
  0x5b   :  { %445 = vmatpush1.msra.mxu0 %v270_v16  ;;  %v392_v16 = vld [vmem:[#allocation4 + $0x3f0] sm:$0xff] }
  0x5c   :  { %446 = vmatprep.subr.mxu0 %v267_v17  ;;  %v389_v17 = vld [vmem:[#allocation4 + $0x3d8] sm:$0xff] }
  0x5d   :  { %447 = vmatpush1.msra.mxu0 %v266_v18  ;;  %v388_v18 = vld [vmem:[#allocation4 + $0x3d0] sm:$0xff] }
  0x5e   :  { %448 = vmatprep.subr.mxu0 %v391_v19  ;;  %v385_v19 = vld [vmem:[#allocation4 + $0x3b8] sm:$0xff] }
  0x5f   :  { %449 = vmatpush2.msra.mxu0 %v390_v20  ;;  %v384_v20 = vld [vmem:[#allocation4 + $0x3b0] sm:$0xff] }
  0x60   :  { %450 = vmatprep.subr.mxu0 %v387_v21  ;;  %v381_v21 = vld [vmem:[#allocation4 + $0x398] sm:$0xff] }
  0x61   :  { %451 = vmatpush2.msra.mxu0 %v386_v22  ;;  %v380_v22 = vld [vmem:[#allocation4 + $0x390] sm:$0xff] }
  0x62   :  { %452 = vmatprep.subr.mxu0 %v383_v23  ;;  %v377_v23 = vld [vmem:[#allocation4 + $0x378] sm:$0xff] }
  0x63   :  { %453 = vmatpush2.msra.mxu0 %v382_v24  ;;  %v376_v24 = vld [vmem:[#allocation4 + $0x370] sm:$0xff] }
  0x64   :  { %454 = vmatprep.subr.mxu0 %v379_v25  ;;  %v373_v25 = vld [vmem:[#allocation4 + $0x358] sm:$0xff] }
  0x65   :  { %455 = vmatpush2.msra.mxu0 %v378_v26  ;;  %v372_v26 = vld [vmem:[#allocation4 + $0x350] sm:$0xff] }
  0x66   :  { %456 = vmatprep.subr.mxu0 %v375_v27  ;;  %v369_v27 = vld [vmem:[#allocation4 + $0x338] sm:$0xff] }
  0x67   :  { %457 = vmatpush2.msra.mxu0 %v374_v28  ;;  %v368_v28 = vld [vmem:[#allocation4 + $0x330] sm:$0xff] }
  0x68   :  { %458 = vmatprep.subr.mxu0 %v371_v29  ;;  %v365_v29 = vld [vmem:[#allocation4 + $0x318] sm:$0xff] }
  0x69   :  { %459 = vmatpush2.msra.mxu0 %v370_v30  ;;  %v364_v30 = vld [vmem:[#allocation4 + $0x310] sm:$0xff] }
  0x6a   :  { %460 = vmatprep.subr.mxu0 %v367_v31  ;;  %v361_v31 = vld [vmem:[#allocation4 + $0x2f8] sm:$0xff] }
  0x6b   :  { %461 = vmatpush2.msra.mxu0 %v366_v32  ;;  %v360_v32 = vld [vmem:[#allocation4 + $0x2f0] sm:$0xff] }
  0x6c   :  { %462 = vmatprep.subr.mxu0 %v363_v33  ;;  %v357_v33 = vld [vmem:[#allocation4 + $0x2d8] sm:$0xff] }
  0x6d   :  { %463 = vmatpush2.msra.mxu0 %v362_v34  ;;  %v356_v34 = vld [vmem:[#allocation4 + $0x2d0] sm:$0xff] }
  0x6e   :  { %464 = vmatprep.subr.mxu0 %v359_v35  ;;  %v353_v35 = vld [vmem:[#allocation4 + $0x2b8] sm:$0xff] }
  0x6f   :  { %465 = vmatpush2.msra.mxu0 %v358_v36  ;;  %v352_v36 = vld [vmem:[#allocation4 + $0x2b0] sm:$0xff] }
  0x70   :  { %466 = vmatprep.subr.mxu0 %v355_v37  ;;  %v349_v37 = vld [vmem:[#allocation4 + $0x298] sm:$0xff] }
  0x71   :  { %467 = vmatpush2.msra.mxu0 %v354_v38  ;;  %v348_v38 = vld [vmem:[#allocation4 + $0x290] sm:$0xff] }
  0x72   :  { %468 = vmatprep.subr.mxu0 %v351_v39  ;;  %v343_v39 = vld [vmem:[#allocation4 + $0x268] sm:$0xff] }
  0x73   :  { %469 = vmatpush2.msra.mxu0 %v350_v40  ;;  %v345_v40 = vld [vmem:[#allocation4 + $0x278] sm:$0xff] }
  0x74   :  { %470 = vmatprep.subr.mxu0 %v347_v41  ;;  %v342_v41 = vld [vmem:[#allocation4 + $0x260] sm:$0xff] }
  0x75   :  { %471 = vmatpush2.msra.mxu0 %v346_v42  ;;  %v344_v42 = vld [vmem:[#allocation4 + $0x270] sm:$0xff] }
  0x76   :  { %472 = vmatprep.subr.mxu0 %v343_v39 }
  0x77   :  { %473 = vmatpush2.msra.mxu0 %v342_v41 }
  0xfd   :  { %v144_v44 = vpop.f32.mrf.mxu0 }
  0xfe   :  { %v145_v45 = vadd.f32 %v568_v43, %v144_v44  ;;  %v339_v43 = vld [vmem:[#allocation4 + $0x248] sm:$0xff]  ;;  %v341_v44 = vld [vmem:[#allocation4 + $0x258] sm:$0xff] }
  0xff   :  { %v620_v46 = vpop.f32.mrf.mxu0  ;;  %474 = vmatprep.subr.mxu0 %v339_v43 }
 0x100   :  { %v148_v47 = vmax.f32 %v145_v45, 0.0  ;;  %v338_v45 = vld [vmem:[#allocation4 + $0x240] sm:$0xff]  ;;  %v340_v46 = vld [vmem:[#allocation4 + $0x250] sm:$0xff] }
 0x101   :  { %475 = vmatpush2.msra.mxu0 %v338_v45 }
 0x102   :  { %258 = vmatmul.mubr.f32.vlgmr.msra.gmra.mxu1 %v148_v47  ;;  %v335_v47 = vld [vmem:[#allocation4 + $0x228] sm:$0xff] }
 0x103   :  { %488 = vmatpush1.msra.mxu1 %v328_v48  ;;  %v337_v48 = vld [vmem:[#allocation4 + $0x238] sm:$0xff]  ;;  %476 = vmatprep.subr.mxu0 %v335_v47 }
 0x104   :  { %489 = vmatprep.subr.mxu1 %v325_v49  ;;  %v334_v49 = vld [vmem:[#allocation4 + $0x220] sm:$0xff] }
 0x105   :  { %490 = vmatpush1.msra.mxu1 %v324_v50  ;;  %v336_v50 = vld [vmem:[#allocation4 + $0x230] sm:$0xff]  ;;  %477 = vmatpush2.msra.mxu0 %v334_v49 }
 0x106   :  { %491 = vmatprep.subr.mxu1 %v321_v51  ;;  %v331_v51 = vld [vmem:[#allocation4 + $0x208] sm:$0xff] }
 0x107   :  { %492 = vmatpush1.msra.mxu1 %v320_v52  ;;  %v333_v52 = vld [vmem:[#allocation4 + $0x218] sm:$0xff]  ;;  %478 = vmatprep.subr.mxu0 %v331_v51 }
 0x108   :  { %493 = vmatprep.subr.mxu1 %v317_v53  ;;  %v330_v53 = vld [vmem:[#allocation4 + $0x200] sm:$0xff] }
 0x109   :  { %494 = vmatpush1.msra.mxu1 %v316_v54  ;;  %v332_v54 = vld [vmem:[#allocation4 + $0x210] sm:$0xff]  ;;  %479 = vmatpush2.msra.mxu0 %v330_v53 }
 0x10a   :  { %495 = vmatprep.subr.mxu1 %v313_v55  ;;  %v183_v55 = vlaneseq }
 0x10b   :  { %496 = vmatpush1.msra.mxu1 %v312_v56 }
 0x10c   :  { %497 = vmatprep.subr.mxu1 %v309_v57  ;;  %v184_v56 = vshrl.u32 %v183_v55, 7 }
 0x10d   :  { %498 = vmatpush1.msra.mxu1 %v308_v58  ;;  %v181_v58 = vld [vmem:[%s821_s4] sm:$0x3] }
 0x10e   :  { %499 = vmatprep.subr.mxu1 %v305_v59  ;;  %v185_v57 = vsub.s32 0, %v184_v56  ;;  %v189_v59 = vsub.s32 1, %v184_v56 }
 0x10f   :  { %500 = vmatpush1.msra.mxu1 %v304_v60 }
 0x110   :  { %501 = vmatprep.subr.mxu1 %v301_v61  ;;  %v186_v60 = vrot.slane %v181_v58, %v185_v57  ;;  %v190_v61 = vrot.slane %v181_v58, %v189_v59 }
 0x111   :  { %502 = vmatpush1.msra.mxu1 %v300_v62 }
 0x112   :  { %503 = vmatprep.subr.mxu1 %v297_v63 }
 0x113   :  { %504 = vmatpush1.msra.mxu1 %v296_v0 }
 0x114   :  { %505 = vmatprep.subr.mxu1 %v293_v1 }
 0x115   :  { %506 = vmatpush1.msra.mxu1 %v292_v2 }
 0x116   :  { %507 = vmatprep.subr.mxu1 %v289_v3 }
 0x117   :  { %508 = vmatpush1.msra.mxu1 %v288_v4  ;;  %v406_v4 = vsub.s32 2, %v184_v56 }
 0x118   :  { %509 = vmatprep.subr.mxu1 %v285_v5  ;;  %v394_v5 = vld [vmem:[%s823_s6] sm:$0xf] }
 0x119   :  { %510 = vmatpush1.msra.mxu1 %v284_v6  ;;  %v410_v6 = vsub.s32 3, %v184_v56 }
 0x11a   :  { %511 = vmatprep.subr.mxu1 %v281_v7  ;;  %v399_v7 = vrot.slane %v394_v5, %v185_v57 }
 0x11b   :  { %512 = vmatpush1.msra.mxu1 %v280_v8  ;;  %v407_v8 = vrot.slane %v394_v5, %v406_v4 }
 0x11c   :  { %513 = vmatprep.subr.mxu1 %v277_v9  ;;  %v403_v9 = vrot.slane %v394_v5, %v189_v59 }
 0x11d   :  { %514 = vmatpush1.msra.mxu1 %v276_v10  ;;  %v411_v10 = vrot.slane %v394_v5, %v410_v6 }
 0x11e   :  { %515 = vmatprep.subr.mxu1 %v273_v11 }
 0x11f   :  { %516 = vmatpush1.msra.mxu1 %v272_v12 }
 0x120   :  { %517 = vmatprep.subr.mxu1 %v269_v13 }
 0x121   :  { %518 = vmatpush1.msra.mxu1 %v268_v14 }
 0x122   :  { %519 = vmatprep.subr.mxu1 %v393_v15 }
 0x123   :  { %520 = vmatpush2.msra.mxu1 %v392_v16 }
 0x124   :  { %521 = vmatprep.subr.mxu1 %v389_v17 }
 0x125   :  { %522 = vmatpush2.msra.mxu1 %v388_v18 }
 0x126   :  { %523 = vmatprep.subr.mxu1 %v385_v19 }
 0x127   :  { %524 = vmatpush2.msra.mxu1 %v384_v20 }
 0x128   :  { %525 = vmatprep.subr.mxu1 %v381_v21 }
 0x129   :  { %526 = vmatpush2.msra.mxu1 %v380_v22 }
 0x12a   :  { %527 = vmatprep.subr.mxu1 %v377_v23 }
 0x12b   :  { %528 = vmatpush2.msra.mxu1 %v376_v24 }
 0x12c   :  { %529 = vmatprep.subr.mxu1 %v373_v25 }
 0x12d   :  { %530 = vmatpush2.msra.mxu1 %v372_v26 }
 0x12e   :  { %531 = vmatprep.subr.mxu1 %v369_v27 }
 0x12f   :  { %532 = vmatpush2.msra.mxu1 %v368_v28 }
 0x130   :  { %533 = vmatprep.subr.mxu1 %v365_v29 }
 0x131   :  { %534 = vmatpush2.msra.mxu1 %v364_v30 }
 0x132   :  { %535 = vmatprep.subr.mxu1 %v361_v31 }
 0x133   :  { %536 = vmatpush2.msra.mxu1 %v360_v32 }
 0x134   :  { %537 = vmatprep.subr.mxu1 %v357_v33 }
 0x135   :  { %538 = vmatpush2.msra.mxu1 %v356_v34 }
 0x136   :  { %539 = vmatprep.subr.mxu1 %v353_v35 }
 0x137   :  { %540 = vmatpush2.msra.mxu1 %v352_v36 }
 0x138   :  { %541 = vmatprep.subr.mxu1 %v349_v37 }
 0x139   :  { %542 = vmatpush2.msra.mxu1 %v348_v38 }
 0x13a   :  { %543 = vmatprep.subr.mxu1 %v345_v40 }
 0x13b   :  { %544 = vmatpush2.msra.mxu1 %v344_v42 }
 0x13c   :  { %545 = vmatprep.subr.mxu1 %v341_v44 }
 0x13d   :  { %546 = vmatpush2.msra.mxu1 %v340_v46 }
 0x13e   :  { %547 = vmatprep.subr.mxu1 %v337_v48 }
 0x13f   :  { %548 = vmatpush2.msra.mxu1 %v336_v50 }
 0x140   :  { %549 = vmatprep.subr.mxu1 %v333_v52 }
 0x141   :  { %550 = vmatpush2.msra.mxu1 %v332_v54 }
 0x1c2   :  { %v259_v62 = vpop.f32.mrf.mxu1 }
 0x1c3   :  { %v260_v63 = vadd.f32 %v259_v62, %v186_v60 }
 0x1c4   :  { %v261_v0 = vpop.f32.mrf.mxu1 }
 0x1c5   :  { %v262_v1 = vadd.f32 %v261_v0, %v190_v61  ;;  %v264_v3 = vmax.f32 %v260_v63, 0.0 }
 0x1c7   :  { %v265_v2 = vmax.f32 %v262_v1, 0.0 }
 0x1c9   :  { %480 = vmatprep.mubr.f32.mxu0 %v265_v2  ;;  %551 = vmatprep.mubr.f32.mxu1 %v265_v2 }
 0x1ca   :  { %481 = vmatmul.mubr.f32.vlgmr.msra.gmra.mxu0 %v264_v3  ;;  %552 = vmatmul.mubr.f32.vlgmr.msra.gmra.mxu1 %v264_v3 }
 0x28a   :  { %v482_v11 = vpop.f32.mrf.mxu0  ;;  %v553_v12 = vpop.f32.mrf.mxu1 }
 0x28b   :  { %v483_v13 = vadd.f32 %v482_v11, %v399_v7  ;;  %v554_v14 = vadd.f32 %v553_v12, %v407_v8 }
 0x28c   :  { %v484_v15 = vpop.f32.mrf.mxu0  ;;  %v555_v16 = vpop.f32.mrf.mxu1 }
 0x28d   :  { %558 = vst [vmem:[%s824_s7] sm:$0xff] %v483_v13  ;;  %560 = vst [vmem:[%s824_s7 + $0x10] sm:$0xff] %v554_v14  ;;  %v485_v17 = vadd.f32 %v484_v15, %v403_v9  ;;  %v556_v18 = vadd.f32 %v555_v16, %v411_v10 }
 0x28f   :  { %559 = vst [vmem:[%s824_s7 + $0x8] sm:$0xff] %v485_v17  ;;  %561 = vst [vmem:[%s824_s7 + $0x18] sm:$0xff] %v556_v18 }
 0x290   :  { %566 = vsyncpa [#allocation3], 1 }
 0x291   :  { %567 = vsyncpa [#allocation5], 1 }

</bundles_post_ra>
